<compile_context>
chip_gen: v5e
topology: v5e:2x2
jax: 0.10.0
libtpu: 0.0.40
codegen_flags: <defaults>
</compile_context>

<pallas_src>
import jax
import jax.numpy as jnp
import numpy as np
from jax.experimental import pallas as pl
from jax.experimental.pallas import tpu as pltpu

# ---------------- problem sizes (small, consistent with the module) ----------
N = 2              # batch
H = W = 16         # spectrogram spatial size
C_HEAD = 64        # head conv output channels (Densenet201 branch)
OUT = 10           # out_size
OUT_PAD = 128      # lane-dense padded classifier width (sliced back in wrapper)
KH = KW = 3        # head conv kernel
NHW = N * H * W    # 512: batch*spatial, the lane dimension inside the kernel

# taps: 9 conv taps + 1 constant-one "bias tap", zero-padded to 16 for the MXU
BIAS_TAP = KH * KW            # 9
KPAD = 16
C1 = C_HEAD + 1               # 64 conv channels + 1 constant-one channel

# packed parameter/constant slab layout (SLAB_ROWS x NHW lanes, f32)
W2_COL = 128                  # classifier weights live in lanes [128, 256)
MASK_ROW = 72                 # 9 boundary masks at rows [72, 81)
POOL_ROW = 88                 # pooling matrix (transposed) at rows [88, 96)
SLAB_ROWS = 96
NPAD = 8                      # output rows padded to a full (8, 128) tile

# lane offsets of the 9 conv taps (dy*W + dx for dy, dx in {-1, 0, 1})
OFFS = tuple((k // KW - 1) * W + (k % KW - 1) for k in range(KH * KW))


def audio_kernel(x_ref, slab_ref, o_ref, taps_ref):
    """Fused forward: 3x3 conv (+bias) as one MXU matmul over 9 rolled/masked
    taps, ReLU, global-average-pool as a pooling-matrix matmul, and the padded
    linear classifier (bias folded in) -- all batch items in one invocation."""
    x = x_ref[...]                                   # (1, NHW): batch*spatial on lanes

    # ---- stage the (16, NHW) tap matrix in VMEM scratch ----------------------
    # rows 0..8 : boundary-masked shifted copies of x (zero-padded 3x3 conv)
    # row  9    : constant ones (folds the conv bias into the matmul)
    # rows 10..15: zeros (K padded to 16)
    taps_ref[BIAS_TAP:BIAS_TAP + 1, :] = jnp.ones((1, NHW), jnp.float32)
    taps_ref[BIAS_TAP + 1:KPAD, :] = jnp.zeros((KPAD - BIAS_TAP - 1, NHW), jnp.float32)
    for k in range(KH * KW):
        off = OFFS[k]
        # XLU lane rotation (free relative to MXU/VPU slots)
        shifted = x if off == 0 else pltpu.roll(x, shift=(-off) % NHW, axis=1)
        mask = slab_ref[MASK_ROW + k:MASK_ROW + k + 1, :]        # (1, NHW) precomputed
        taps_ref[k:k + 1, :] = shifted * mask

    # ---- conv (+bias) on the MXU, single ReLU on the VPU ---------------------
    w1 = slab_ref[0:C1, 0:KPAD]                      # (65, 16): conv weights | bias tap
    act = jnp.maximum(
        jnp.dot(w1, taps_ref[...], preferred_element_type=jnp.float32), 0.0)  # (65, NHW)

    # ---- global average pool as a second MXU matmul --------------------------
    # poolT[n, p] = 1/(H*W) iff lane p belongs to image n; contracting the
    # shared NHW lane dim gives feat[n, c] = mean over image n of act[c, :].
    poolT = slab_ref[POOL_ROW:POOL_ROW + NPAD, :]    # (8, NHW)
    feat = jax.lax.dot_general(poolT, act, (((1,), (1,)), ((), ())),
                               preferred_element_type=jnp.float32)   # (8, 65)

    # ---- classifier (bias folded in via feat[:, 64] == 1) --------------------
    w2 = slab_ref[0:C1, W2_COL:W2_COL + OUT_PAD]     # (65, 128)
    o_ref[...] = jnp.dot(feat, w2, preferred_element_type=jnp.float32)  # full (8,128) tile


def prepare_params(wc, bc, wfc, bfc):
    """One-time packing of all parameters + derived constants into a single
    lane-dense (96, 512) f32 slab (hoisted out of the per-call forward path).

    PyTorch layouts: wc (C_HEAD,1,KH,KW), bc (C_HEAD,), wfc (OUT,C_HEAD), bfc (OUT,)."""
    wc = np.asarray(wc, np.float32)
    bc = np.asarray(bc, np.float32)
    wfc = np.asarray(wfc, np.float32)
    bfc = np.asarray(bfc, np.float32)

    slab = np.zeros((SLAB_ROWS, NHW), np.float32)
    # conv weights as (64, 9) tap-major, conv bias folded in as tap 9
    slab[0:C_HEAD, 0:KH * KW] = wc.reshape(C_HEAD, KH * KW)
    slab[0:C_HEAD, BIAS_TAP] = bc
    slab[C_HEAD, BIAS_TAP] = 1.0        # extra channel -> constant-1 feature
    # classifier weights (transposed, zero-padded to 128 lanes) + bias row
    slab[0:C_HEAD, W2_COL:W2_COL + OUT] = wfc.T
    slab[C_HEAD, W2_COL:W2_COL + OUT] = bfc
    # 9 zero-padding masks for the 3x3 taps, tiled over the batch
    pos = np.arange(H * W)
    row, col = pos // W, pos % W
    for k in range(KH * KW):
        dy, dx = k // KW - 1, k % KW - 1
        valid = ((row + dy >= 0) & (row + dy < H) &
                 (col + dx >= 0) & (col + dx < W)).astype(np.float32)
        slab[MASK_ROW + k] = np.tile(valid, N)
    # pooling matrix (transposed): mean over each image's H*W lanes
    for n in range(N):
        slab[POOL_ROW + n, n * H * W:(n + 1) * H * W] = 1.0 / (H * W)
    return jnp.asarray(slab)


@jax.jit
def audio_model_pallas(x_nchw, slab):
    """x_nchw: (N, 1, H, W) f32; slab: packed params/constants from
    prepare_params(). Returns logits (N, OUT)."""
    n, c, h, w = x_nchw.shape
    assert c == 1 and n * h * w == NHW
    x_flat = x_nchw.reshape(1, n * h * w)            # (1, NHW): contiguous view

    # Single invocation, no grid: every operand is a tiny full-array VMEM block.
    # TODO(synk): once the DenseNet-201 body lands, add a "parallel" grid axis
    # (dimension_semantics) so v7x shards across both TensorCores, and size the
    # activation tiles / vmem_limit_bytes against v7x's 64 MiB VMEM.
    out = pl.pallas_call(
        audio_kernel,
        out_shape=jax.ShapeDtypeStruct((NPAD, OUT_PAD), jnp.float32),
        scratch_shapes=[pltpu.VMEM((KPAD, NHW), jnp.float32)],
    )(x_flat, slab)
    return out[:n, :OUT]


def reference_jax(x_nchw, wc, bc, wfc, bfc):
    """Pure-JAX reference: conv -> relu -> GAP -> linear (PyTorch layouts)."""
    x = jnp.transpose(x_nchw, (0, 2, 3, 1))              # NHWC, C=1
    k = jnp.transpose(wc, (2, 3, 1, 0))                  # HWIO
    y = jax.lax.conv_general_dilated(
        x, k, window_strides=(1, 1), padding="SAME",
        dimension_numbers=("NHWC", "HWIO", "NHWC"))
    y = jnp.maximum(y + bc.reshape(1, 1, 1, C_HEAD), 0.0)
    feat = jnp.mean(y, axis=(1, 2))                      # (N, 64)
    return feat @ wfc.T + bfc.reshape(1, OUT)


if __name__ == "__main__":
    key = jax.random.PRNGKey(0)
    kx, kw1, kb1, kw2, kb2 = jax.random.split(key, 5)

    # deterministic synthetic parameters in the module's native layouts
    wc = 0.1 * jax.random.normal(kw1, (C_HEAD, 1, KH, KW), dtype=jnp.float32)
    bc = 0.05 * jax.random.normal(kb1, (C_HEAD,), dtype=jnp.float32)
    wfc = 0.1 * jax.random.normal(kw2, (OUT, C_HEAD), dtype=jnp.float32)
    bfc = 0.05 * jax.random.normal(kb2, (OUT,), dtype=jnp.float32)

    # input: mono "spectrogram" batch, NCHW like the PyTorch module expects
    x = jax.random.normal(kx, (N, 1, H, W), dtype=jnp.float32)

    slab = prepare_params(wc, bc, wfc, bfc)              # one-time packing (init-time)
    logits = jax.block_until_ready(audio_model_pallas(x, slab))

    ref = reference_jax(x, wc, bc, wfc, bfc)
    np.testing.assert_allclose(np.asarray(logits), np.asarray(ref),
                               rtol=1e-4, atol=1e-4)
    assert logits.shape == (N, OUT)
    print("KERNEL_OK")
</pallas_src>

<mosaic_0001>
module attributes {stable_mosaic.version = 11 : i64} {
  func.func @audio_kernel(%arg0: memref<1x512xf32, #tpu.memory_space<vmem>>, %arg1: memref<96x512xf32, #tpu.memory_space<vmem>>, %arg2: memref<8x128xf32, #tpu.memory_space<vmem>>, %arg3: memref<16x512xf32, #tpu.memory_space<vmem>>) attributes {dimension_semantics = [], scalar_prefetch = 0 : i64, scratch_operands = 1 : i64, tpu.core_type = #tpu.core_type<tc>} {
    %c0 = arith.constant 0 : index
    %c0_0 = arith.constant 0 : index
    %0 = vector.load %arg0[%c0, %c0_0] : memref<1x512xf32, #tpu.memory_space<vmem>>, vector<1x512xf32>
    %cst = arith.constant 1.000000e+00 : f32
    %1 = vector.broadcast %cst : f32 to vector<1x512xf32>
    %c9 = arith.constant 9 : index
    %c0_1 = arith.constant 0 : index
    %2 = vector.load %arg3[%c9, %c0_1] : memref<16x512xf32, #tpu.memory_space<vmem>>, vector<1x512xf32>
    tpu.vector_store %arg3[%c9, %c0_1], %1 {strides = array<i32>} : memref<16x512xf32, #tpu.memory_space<vmem>>, vector<1x512xf32>,
    %cst_2 = arith.constant 0.000000e+00 : f32
    %3 = vector.broadcast %cst_2 : f32 to vector<6x512xf32>
    %c10 = arith.constant 10 : index
    %c0_3 = arith.constant 0 : index
    %4 = vector.load %arg3[%c10, %c0_3] : memref<16x512xf32, #tpu.memory_space<vmem>>, vector<6x512xf32>
    tpu.vector_store %arg3[%c10, %c0_3], %3 {strides = array<i32>} : memref<16x512xf32, #tpu.memory_space<vmem>>, vector<6x512xf32>,
    %c17_i32 = arith.constant 17 : i32
    %5 = tpu.dynamic_rotate %0 by %c17_i32 dim 1 : vector<1x512xf32>, i32 -> vector<1x512xf32>
    %c72 = arith.constant 72 : index
    %c0_4 = arith.constant 0 : index
    %6 = vector.load %arg1[%c72, %c0_4] : memref<96x512xf32, #tpu.memory_space<vmem>>, vector<1x512xf32>
    %7 = arith.mulf %5, %6 : vector<1x512xf32>
    %c0_5 = arith.constant 0 : index
    %c0_6 = arith.constant 0 : index
    %8 = vector.load %arg3[%c0_5, %c0_6] : memref<16x512xf32, #tpu.memory_space<vmem>>, vector<1x512xf32>
    tpu.vector_store %arg3[%c0_5, %c0_6], %7 {strides = array<i32>} : memref<16x512xf32, #tpu.memory_space<vmem>>, vector<1x512xf32>,
    %c16_i32 = arith.constant 16 : i32
    %9 = tpu.dynamic_rotate %0 by %c16_i32 dim 1 : vector<1x512xf32>, i32 -> vector<1x512xf32>
    %c73 = arith.constant 73 : index
    %c0_7 = arith.constant 0 : index
    %10 = vector.load %arg1[%c73, %c0_7] : memref<96x512xf32, #tpu.memory_space<vmem>>, vector<1x512xf32>
    %11 = arith.mulf %9, %10 : vector<1x512xf32>
    %c1 = arith.constant 1 : index
    %c0_8 = arith.constant 0 : index
    %12 = vector.load %arg3[%c1, %c0_8] : memref<16x512xf32, #tpu.memory_space<vmem>>, vector<1x512xf32>
    tpu.vector_store %arg3[%c1, %c0_8], %11 {strides = array<i32>} : memref<16x512xf32, #tpu.memory_space<vmem>>, vector<1x512xf32>,
    %c15_i32 = arith.constant 15 : i32
    %13 = tpu.dynamic_rotate %0 by %c15_i32 dim 1 : vector<1x512xf32>, i32 -> vector<1x512xf32>
    %c74 = arith.constant 74 : index
    %c0_9 = arith.constant 0 : index
    %14 = vector.load %arg1[%c74, %c0_9] : memref<96x512xf32, #tpu.memory_space<vmem>>, vector<1x512xf32>
    %15 = arith.mulf %13, %14 : vector<1x512xf32>
    %c2 = arith.constant 2 : index
    %c0_10 = arith.constant 0 : index
    %16 = vector.load %arg3[%c2, %c0_10] : memref<16x512xf32, #tpu.memory_space<vmem>>, vector<1x512xf32>
    tpu.vector_store %arg3[%c2, %c0_10], %15 {strides = array<i32>} : memref<16x512xf32, #tpu.memory_space<vmem>>, vector<1x512xf32>,
    %c1_i32 = arith.constant 1 : i32
    %17 = tpu.dynamic_rotate %0 by %c1_i32 dim 1 : vector<1x512xf32>, i32 -> vector<1x512xf32>
    %c75 = arith.constant 75 : index
    %c0_11 = arith.constant 0 : index
    %18 = vector.load %arg1[%c75, %c0_11] : memref<96x512xf32, #tpu.memory_space<vmem>>, vector<1x512xf32>
    %19 = arith.mulf %17, %18 : vector<1x512xf32>
    %c3 = arith.constant 3 : index
    %c0_12 = arith.constant 0 : index
    %20 = vector.load %arg3[%c3, %c0_12] : memref<16x512xf32, #tpu.memory_space<vmem>>, vector<1x512xf32>
    tpu.vector_store %arg3[%c3, %c0_12], %19 {strides = array<i32>} : memref<16x512xf32, #tpu.memory_space<vmem>>, vector<1x512xf32>,
    %c76 = arith.constant 76 : index
    %c0_13 = arith.constant 0 : index
    %21 = vector.load %arg1[%c76, %c0_13] : memref<96x512xf32, #tpu.memory_space<vmem>>, vector<1x512xf32>
    %22 = arith.mulf %0, %21 : vector<1x512xf32>
    %c4 = arith.constant 4 : index
    %c0_14 = arith.constant 0 : index
    %23 = vector.load %arg3[%c4, %c0_14] : memref<16x512xf32, #tpu.memory_space<vmem>>, vector<1x512xf32>
    tpu.vector_store %arg3[%c4, %c0_14], %22 {strides = array<i32>} : memref<16x512xf32, #tpu.memory_space<vmem>>, vector<1x512xf32>,
    %c511_i32 = arith.constant 511 : i32
    %24 = tpu.dynamic_rotate %0 by %c511_i32 dim 1 : vector<1x512xf32>, i32 -> vector<1x512xf32>
    %c77 = arith.constant 77 : index
    %c0_15 = arith.constant 0 : index
    %25 = vector.load %arg1[%c77, %c0_15] : memref<96x512xf32, #tpu.memory_space<vmem>>, vector<1x512xf32>
    %26 = arith.mulf %24, %25 : vector<1x512xf32>
    %c5 = arith.constant 5 : index
    %c0_16 = arith.constant 0 : index
    %27 = vector.load %arg3[%c5, %c0_16] : memref<16x512xf32, #tpu.memory_space<vmem>>, vector<1x512xf32>
    tpu.vector_store %arg3[%c5, %c0_16], %26 {strides = array<i32>} : memref<16x512xf32, #tpu.memory_space<vmem>>, vector<1x512xf32>,
    %c497_i32 = arith.constant 497 : i32
    %28 = tpu.dynamic_rotate %0 by %c497_i32 dim 1 : vector<1x512xf32>, i32 -> vector<1x512xf32>
    %c78 = arith.constant 78 : index
    %c0_17 = arith.constant 0 : index
    %29 = vector.load %arg1[%c78, %c0_17] : memref<96x512xf32, #tpu.memory_space<vmem>>, vector<1x512xf32>
    %30 = arith.mulf %28, %29 : vector<1x512xf32>
    %c6 = arith.constant 6 : index
    %c0_18 = arith.constant 0 : index
    %31 = vector.load %arg3[%c6, %c0_18] : memref<16x512xf32, #tpu.memory_space<vmem>>, vector<1x512xf32>
    tpu.vector_store %arg3[%c6, %c0_18], %30 {strides = array<i32>} : memref<16x512xf32, #tpu.memory_space<vmem>>, vector<1x512xf32>,
    %c496_i32 = arith.constant 496 : i32
    %32 = tpu.dynamic_rotate %0 by %c496_i32 dim 1 : vector<1x512xf32>, i32 -> vector<1x512xf32>
    %c79 = arith.constant 79 : index
    %c0_19 = arith.constant 0 : index
    %33 = vector.load %arg1[%c79, %c0_19] : memref<96x512xf32, #tpu.memory_space<vmem>>, vector<1x512xf32>
    %34 = arith.mulf %32, %33 : vector<1x512xf32>
    %c7 = arith.constant 7 : index
    %c0_20 = arith.constant 0 : index
    %35 = vector.load %arg3[%c7, %c0_20] : memref<16x512xf32, #tpu.memory_space<vmem>>, vector<1x512xf32>
    tpu.vector_store %arg3[%c7, %c0_20], %34 {strides = array<i32>} : memref<16x512xf32, #tpu.memory_space<vmem>>, vector<1x512xf32>,
    %c495_i32 = arith.constant 495 : i32
    %36 = tpu.dynamic_rotate %0 by %c495_i32 dim 1 : vector<1x512xf32>, i32 -> vector<1x512xf32>
    %c80 = arith.constant 80 : index
    %c0_21 = arith.constant 0 : index
    %37 = vector.load %arg1[%c80, %c0_21] : memref<96x512xf32, #tpu.memory_space<vmem>>, vector<1x512xf32>
    %38 = arith.mulf %36, %37 : vector<1x512xf32>
    %c8 = arith.constant 8 : index
    %c0_22 = arith.constant 0 : index
    %39 = vector.load %arg3[%c8, %c0_22] : memref<16x512xf32, #tpu.memory_space<vmem>>, vector<1x512xf32>
    tpu.vector_store %arg3[%c8, %c0_22], %38 {strides = array<i32>} : memref<16x512xf32, #tpu.memory_space<vmem>>, vector<1x512xf32>,
    %c0_23 = arith.constant 0 : index
    %c0_24 = arith.constant 0 : index
    %40 = vector.load %arg1[%c0_23, %c0_24] : memref<96x512xf32, #tpu.memory_space<vmem>>, vector<65x16xf32>
    %c0_25 = arith.constant 0 : index
    %c0_26 = arith.constant 0 : index
    %41 = vector.load %arg3[%c0_25, %c0_26] : memref<16x512xf32, #tpu.memory_space<vmem>>, vector<16x512xf32>
    %cst_27 = arith.constant dense<0.000000e+00> : vector<65x512xf32>
    %42 = tpu.matmul %40, %41, %cst_27 {dimension_numbers = #tpu.dot_dimension_numbers<[1], [0], [0], [1], [0, 0, 1, 1], [], []>} : vector<65x16xf32>, vector<16x512xf32>, vector<65x512xf32> -> vector<65x512xf32>
    %cst_28 = arith.constant 0.000000e+00 : f32
    %43 = vector.broadcast %cst_28 : f32 to vector<65x512xf32>
    %44 = arith.maximumf %42, %43 : vector<65x512xf32>
    %c88 = arith.constant 88 : index
    %c0_29 = arith.constant 0 : index
    %45 = vector.load %arg1[%c88, %c0_29] : memref<96x512xf32, #tpu.memory_space<vmem>>, vector<8x512xf32>
    %cst_30 = arith.constant dense<0.000000e+00> : vector<8x65xf32>
    %46 = tpu.matmul %45, %44, %cst_30 {dimension_numbers = #tpu.dot_dimension_numbers<[1], [1], [0], [0], [0, 0, 1, 0], [], []>} : vector<8x512xf32>, vector<65x512xf32>, vector<8x65xf32> -> vector<8x65xf32>
    %c0_31 = arith.constant 0 : index
    %c128 = arith.constant 128 : index
    %47 = vector.load %arg1[%c0_31, %c128] : memref<96x512xf32, #tpu.memory_space<vmem>>, vector<65x128xf32>
    %cst_32 = arith.constant dense<0.000000e+00> : vector<8x128xf32>
    %48 = tpu.matmul %46, %47, %cst_32 {dimension_numbers = #tpu.dot_dimension_numbers<[1], [0], [0], [1], [0, 0, 1, 1], [], []>} : vector<8x65xf32>, vector<65x128xf32>, vector<8x128xf32> -> vector<8x128xf32>
    %c0_33 = arith.constant 0 : index
    %c0_34 = arith.constant 0 : index
    %49 = vector.load %arg2[%c0_33, %c0_34] : memref<8x128xf32, #tpu.memory_space<vmem>>, vector<8x128xf32>
    tpu.vector_store %arg2[%c0_33, %c0_34], %48 {strides = array<i32>} : memref<8x128xf32, #tpu.memory_space<vmem>>, vector<8x128xf32>,
    return
  }
}

</mosaic_0001>

<bundles_post_ra>
// kernel: audio_model_pallas.1
= control target key start
LH: loop header
LB: loop body
LE: loop exit
PB: predicated region body
PF: predicated region fallthrough
CT: control target
= control target key end

     0   :  { %7 = vsyncpa [#allocation4], 0  ;;  %s856_s12 = smov [#allocation3]   ;;  %s857_s14 = smov 512   ;;  %s1079_s0 = inlined_call_operand.vmem [shape: f32[1,512], index: 0, kind: input, shape index: {}]   ;;  %s1080_s1 = inlined_call_operand.hbm [shape: f32[96,512], index: 1, kind: input, shape index: {}]   ;;  %s1081_s2 = inlined_call_operand.vmem [shape: f32[8,128], index: 2, kind: output, shape index: {}]  }
   0x1   :  { %s14_s11 = sshll.u32 %s1080_s1, 4  ;;  %s16_s13 = sshll.u32 %s856_s12, 4  ;;  %s15_s11 = int_to_ptr.hbm [resolvable:$true] %s14_s11  ;;  %s17_s13 = int_to_ptr.vmem [resolvable:$true] %s16_s13 }
   0x2   :  { %s858_s15 = smov 32  }
   0x3   :  { %22 = dma.hbm_to_vmem [thread:$0]  %s15_s11, 6144, %s17_s13, [#allocation4], %s857_s14, %s857_s14, %s858_s15  }
   0x4   :  { %854 = dma.done.wait [#allocation4], 6144  }
   0x5   :  { %855 = vsyncadd [#allocation4], 4294961152  ;;  %v890_v0 = vld [vmem:[%s1079_s0] sm:$0xf]  ;;  %s859_s18 = smov 111   ;;  %s860_s1 = smov 17   ;;  %v28_v6 = vlaneseq }
   0x6   :  { %v42_v1 = vperm.slane %v890_v0, 2  ;;  %v40_v2 = vperm.slane %v890_v0, 0  ;;  %v43_v3 = vperm.slane %v890_v0, 3  ;;  %v41_v4 = vperm.slane %v890_v0, 1  ;;  %s861_s0 = smov 16   ;;  %s862_s19 = smov 15  }
   0x7   :  { %s863_s20 = smov 1   ;;  %s864_s21 = smov 127   ;;  %vm896_vm0 = vcmp.lt.s32.totalorder %v28_v6, 512  ;;  %v867_v8 = vmov 1.0   ;;  %v868_v9 = vmov 0.0   ;;  %v904_v14 = vand.u32 127, %v28_v6 }
   0x8   :  { %356 = vrot.lane.b32.xlu1 %v42_v1, %s859_s18  ;;  %352 = vrot.lane.b32.xlu0 %v40_v2, %s859_s18  ;;  %s865_s22 = smov 113   ;;  %s866_s23 = smov 112   ;;  %33 = vst.msk [vmem:[#allocation2 + $0x21] ss:$8 sm:$0xf] %vm896_vm0, %v867_v8  ;;  %vm87_vm3 = vcmask 1042434  }
   0x9   :  { %48 = vrot.lane.b32.xlu2 %v40_v2, %s860_s1  ;;  %35 = vst [vmem:[#allocation2 + $0x20] sm:$0xfc] %v868_v9  ;;  %v366_v15 = vld [vmem:[#allocation3 + $0x140] ss:$8 sm:$0xf]  ;;  %vm360_vm1 = vcmp.lt.s32.totalorder %v904_v14, 111 }
   0xa   :  { %36 = vst [vmem:[#allocation2 + $0x28] sm:$0xfc] %v868_v9  ;;  %v370_v16 = vperm.slane %v366_v15, 2  ;;  %v371_v17 = vperm.slane %v366_v15, 3  ;;  %v369_v18 = vperm.slane %v366_v15, 1  ;;  %v368_v22 = vperm.slane %v366_v15, 0 }
   0xb   :  { %37 = vst [vmem:[#allocation2 + $0x30] sm:$0xfc] %v868_v9  ;;  %v64_v21 = vld [vmem:[#allocation3 + $0x120] ss:$8 sm:$0xf]  ;;  %vm58_vm2 = vcmp.lt.s32.totalorder %v904_v14, 17 }
   0xc   :  { %38 = vst [vmem:[#allocation2 + $0x38] sm:$0xfc] %v868_v9  ;;  %v67_v31 = vperm.slane %v64_v21, 1  ;;  %vm85_vm4 = vcmask 1040384   ;;  %vm89_vm5 = vcmask 1041408   ;;  %v66_v37 = vperm.slane %v64_v21, 0 }
   0xd   :  { %v68_v40 = vperm.slane %v64_v21, 2  ;;  %v69_v41 = vperm.slane %v64_v21, 3  ;;  %v108_v53 = vld [vmem:[#allocation3 + $0x121] ss:$8 sm:$0xf]  ;;  %vm102_vm6 = vcmp.lt.s32.totalorder %v904_v14, 16 }
   0xe   :  { %v113_v57 = vperm.slane %v108_v53, 3  ;;  %v111_v60 = vperm.slane %v108_v53, 1  ;;  %v112_v61 = vperm.slane %v108_v53, 2  ;;  %vm144_vm7 = vcmp.lt.s32.totalorder %v904_v14, 15 }
   0xf   :  { %vm186_vm8 = vcmp.lt.s32.totalorder %v904_v14, 1  ;;  %vm234_vm9 = vcmp.lt.s32.totalorder %v904_v14, 127  ;;  %vm276_vm10 = vcmp.lt.s32.totalorder %v904_v14, 113  ;;  %vm318_vm11 = vcmp.lt.s32.totalorder %v904_v14, 112 }
  0x10   :  { %358 = vrot.lane.b32.xlu1 %v43_v3, %s859_s18  ;;  %354 = vrot.lane.b32.xlu0 %v41_v4, %s859_s18  ;;  %vm411_vm12 = vcmask 130048   ;;  %vm744_vm13 = vcmask 531456  }
  0x11   :  { %50 = vrot.lane.b32.xlu2 %v41_v4, %s860_s1 }
  0x18   :  { %54 = vrot.lane.b32.xlu1 %v43_v3, %s860_s1  ;;  %52 = vrot.lane.b32.xlu0 %v42_v1, %s860_s1 }
  0x19   :  { %94 = vrot.lane.b32.xlu2 %v40_v2, %s861_s0 }
  0x20   :  { %98 = vrot.lane.b32.xlu1 %v42_v1, %s861_s0  ;;  %96 = vrot.lane.b32.xlu0 %v41_v4, %s861_s0 }
  0x21   :  { %100 = vrot.lane.b32.xlu2 %v43_v3, %s861_s0 }
  0x28   :  { %138 = vrot.lane.b32.xlu1 %v41_v4, %s862_s19  ;;  %136 = vrot.lane.b32.xlu0 %v40_v2, %s862_s19 }
  0x29   :  { %140 = vrot.lane.b32.xlu2 %v42_v1, %s862_s19 }
  0x30   :  { %178 = vrot.lane.b32.xlu1 %v40_v2, %s863_s20  ;;  %142 = vrot.lane.b32.xlu0 %v43_v3, %s862_s19 }
  0x31   :  { %180 = vrot.lane.b32.xlu2 %v41_v4, %s863_s20 }
  0x38   :  { %184 = vrot.lane.b32.xlu1 %v43_v3, %s863_s20  ;;  %182 = vrot.lane.b32.xlu0 %v42_v1, %s863_s20 }
  0x39   :  { %226 = vrot.lane.b32.xlu2 %v40_v2, %s864_s21 }
  0x40   :  { %230 = vrot.lane.b32.xlu1 %v42_v1, %s864_s21  ;;  %228 = vrot.lane.b32.xlu0 %v41_v4, %s864_s21 }
  0x41   :  { %232 = vrot.lane.b32.xlu2 %v43_v3, %s864_s21 }
  0x48   :  { %270 = vrot.lane.b32.xlu1 %v41_v4, %s865_s22  ;;  %268 = vrot.lane.b32.xlu0 %v40_v2, %s865_s22 }
  0x49   :  { %272 = vrot.lane.b32.xlu2 %v42_v1, %s865_s22 }
  0x50   :  { %310 = vrot.lane.b32.xlu1 %v40_v2, %s866_s23  ;;  %274 = vrot.lane.b32.xlu0 %v43_v3, %s865_s22 }
  0x51   :  { %312 = vrot.lane.b32.xlu2 %v41_v4, %s866_s23  ;;  %v110_v4 = vperm.slane %v108_v53, 0  ;;  %v240_v53 = vld [vmem:[#allocation3 + $0x125] ss:$8 sm:$0xf] }
  0x58   :  { %316 = vrot.lane.b32.xlu1 %v43_v3, %s866_s23  ;;  %314 = vrot.lane.b32.xlu0 %v42_v1, %s866_s23 }
  0x63   :  { %v49_v5 = vpop.permute.xlu2 %48 }
  0x6b   :  { %v51_v10 = vpop.permute.xlu2 %50 }
  0x6c   :  { %v61_v36 = vsel %vm58_vm2, %v49_v5, %v51_v10 }
  0x6d   :  { %v75_v43 = vmul.f32 %v67_v31, %v61_v36 }
  0x6f   :  { %v82_v54 = vrot.slane %v75_v43, 7 }
  0x73   :  { %v902_v11 = vpop.permute.xlu2 %94 }
  0x7a   :  { %v357_v12 = vpop.permute.xlu1 %356  ;;  %v353_v13 = vpop.permute.xlu0 %352 }
  0x7b   :  { %v101_v19 = vpop.permute.xlu2 %100 }
  0x82   :  { %v359_v20 = vpop.permute.xlu1 %358  ;;  %v355_v23 = vpop.permute.xlu0 %354 }
  0x83   :  { %v361_v24 = vsel %vm360_vm1, %v357_v12, %v359_v20  ;;  %v364_v25 = vsel %vm360_vm1, %v359_v20, %v353_v13  ;;  %v362_v26 = vsel %vm360_vm1, %v355_v23, %v357_v12  ;;  %v363_v27 = vsel %vm360_vm1, %v353_v13, %v355_v23  ;;  %v141_v49 = vpop.permute.xlu2 %140 }
  0x84   :  { %v378_v28 = vmul.f32 %v370_v16, %v361_v24  ;;  %v379_v29 = vmul.f32 %v371_v17, %v364_v25  ;;  %v377_v30 = vmul.f32 %v369_v18, %v362_v26  ;;  %v376_v34 = vmul.f32 %v368_v22, %v363_v27 }
  0x86   :  { %v385_v32 = vrot.slane %v378_v28, 6  ;;  %v386_v33 = vrot.slane %v379_v29, 5  ;;  %v384_v35 = vrot.slane %v377_v30, 7 }
  0x88   :  { %v388_v38 = vsel %vm87_vm3, %v385_v32, %v386_v33  ;;  %v387_v39 = vsel %vm85_vm4, %v376_v34, %v384_v35 }
  0x89   :  { %v389_v42 = vsel %vm89_vm5, %v387_v39, %v388_v38 }
  0x8a   :  { %392 = vst.msk [vmem:[#allocation2 + $0x20] ss:$8 sm:$0xf] %vm896_vm0, %v389_v42  ;;  %v55_v44 = vpop.permute.xlu1 %54  ;;  %v53_v45 = vpop.permute.xlu0 %52 }
  0x8b   :  { %v62_v46 = vsel %vm58_vm2, %v55_v44, %v49_v5  ;;  %v59_v47 = vsel %vm58_vm2, %v53_v45, %v55_v44  ;;  %v60_v48 = vsel %vm58_vm2, %v51_v10, %v53_v45  ;;  %v106_v5 = vsel %vm102_vm6, %v101_v19, %v902_v11  ;;  %v181_v16 = vpop.permute.xlu2 %180 }
  0x8c   :  { %v74_v50 = vmul.f32 %v66_v37, %v62_v46  ;;  %v76_v51 = vmul.f32 %v68_v40, %v60_v48  ;;  %v77_v52 = vmul.f32 %v69_v41, %v59_v47  ;;  %v118_v17 = vmul.f32 %v110_v4, %v106_v5  ;;  %v192_v37 = vld [vmem:[#allocation3 + $0x123] ss:$8 sm:$0xf] }
  0x8d   :  { %v195_v44 = vperm.slane %v192_v37, 1  ;;  %v194_v47 = vperm.slane %v192_v37, 0 }
  0x8e   :  { %v83_v55 = vrot.slane %v76_v51, 6  ;;  %v84_v56 = vrot.slane %v77_v52, 5  ;;  %v86_v58 = vsel %vm85_vm4, %v74_v50, %v82_v54  ;;  %v196_v51 = vperm.slane %v192_v37, 2 }
  0x8f   :  { %v197_v52 = vperm.slane %v192_v37, 3 }
  0x90   :  { %v88_v59 = vsel %vm87_vm3, %v83_v55, %v84_v56 }
  0x91   :  { %v90_v62 = vsel %vm89_vm5, %v86_v58, %v88_v59  ;;  %v407_v63 = vld [vmem:[#allocation2 + $0x20] sm:$0xff]  ;;  %v409_v1 = vld [vmem:[#allocation2 + $0x30] sm:$0xff]  ;;  %v410_v2 = vld [vmem:[#allocation2 + $0x38] sm:$0xff] }
  0x92   :  { %92 = vst.msk [vmem:[#allocation2] ss:$8 sm:$0xf] %vm896_vm0, %v90_v62  ;;  %v99_v3 = vpop.permute.xlu1 %98  ;;  %453 = vmatpush.msra.mxu0 %v407_v63  ;;  %815 = vmatpush.msra.mxu1 %v407_v63  ;;  %v97_v6 = vpop.permute.xlu0 %96 }
  0x93   :  { %v103_v8 = vsel %vm102_vm6, %v99_v3, %v101_v19  ;;  %541 = vmatpush.msra.mxu2 %v409_v1  ;;  %585 = vmatpush.msra.mxu3 %v410_v2  ;;  %v104_v9 = vsel %vm102_vm6, %v97_v6, %v99_v3  ;;  %v105_v10 = vsel %vm102_vm6, %v902_v11, %v97_v6  ;;  %v150_v11 = vld [vmem:[#allocation3 + $0x122] ss:$8 sm:$0xf]  ;;  %v227_v30 = vpop.permute.xlu2 %226  ;;  %v245_v1 = vperm.slane %v240_v53, 3 }
  0x94   :  { %v121_v12 = vmul.f32 %v113_v57, %v103_v8  ;;  %v119_v13 = vmul.f32 %v111_v60, %v105_v10  ;;  %v120_v15 = vmul.f32 %v112_v61, %v104_v9  ;;  %v154_v26 = vperm.slane %v150_v11, 2 }
  0x95   :  { %v153_v27 = vperm.slane %v150_v11, 1  ;;  %v152_v31 = vperm.slane %v150_v11, 0  ;;  %v155_v32 = vperm.slane %v150_v11, 3  ;;  %v244_v6 = vperm.slane %v240_v53, 2 }
  0x96   :  { %v128_v18 = vrot.slane %v121_v12, 5  ;;  %v126_v20 = vrot.slane %v119_v13, 7  ;;  %v127_v21 = vrot.slane %v120_v15, 6  ;;  %v243_v12 = vperm.slane %v240_v53, 1 }
  0x97   :  { %v221_v13 = vld [vmem:[#allocation3 + $0x124] ss:$8 sm:$0xf] }
  0x98   :  { %v129_v22 = vsel %vm85_vm4, %v118_v17, %v126_v20  ;;  %v130_v19 = vsel %vm87_vm3, %v127_v21, %v128_v18  ;;  %v242_v18 = vperm.slane %v240_v53, 0 }
  0x99   :  { %v131_v23 = vsel %vm89_vm5, %v129_v22, %v130_v19 }
  0x9a   :  { %134 = vst.msk [vmem:[#allocation2 + $0x1] ss:$8 sm:$0xf] %vm896_vm0, %v131_v23  ;;  %v139_v24 = vpop.permute.xlu1 %138  ;;  %v137_v25 = vpop.permute.xlu0 %136 }
  0x9b   :  { %v146_v28 = vsel %vm144_vm7, %v139_v24, %v141_v49  ;;  %v147_v29 = vsel %vm144_vm7, %v137_v25, %v139_v24  ;;  %v233_v54 = vpop.permute.xlu2 %232 }
  0x9c   :  { %v162_v33 = vmul.f32 %v154_v26, %v146_v28  ;;  %v161_v34 = vmul.f32 %v153_v27, %v147_v29  ;;  %v238_v2 = vsel %vm234_vm9, %v233_v54, %v227_v30 }
  0x9d   :  { %v253_v10 = vmul.f32 %v245_v1, %v238_v2 }
  0x9e   :  { %v169_v42 = vrot.slane %v162_v33, 6  ;;  %v168_v43 = vrot.slane %v161_v34, 7 }
  0xa2   :  { %v179_v35 = vpop.permute.xlu1 %178  ;;  %v143_v36 = vpop.permute.xlu0 %142 }
  0xa3   :  { %v145_v38 = vsel %vm144_vm7, %v141_v49, %v143_v36  ;;  %v148_v39 = vsel %vm144_vm7, %v143_v36, %v137_v25  ;;  %v189_v46 = vsel %vm186_vm8, %v179_v35, %v181_v16 }
  0xa4   :  { %v160_v40 = vmul.f32 %v152_v31, %v148_v39  ;;  %v163_v41 = vmul.f32 %v155_v32, %v145_v38  ;;  %v203_v55 = vmul.f32 %v195_v44, %v189_v46  ;;  %v282_v31 = vld [vmem:[#allocation3 + $0x126] ss:$8 sm:$0xf]  ;;  %v273_v32 = vpop.permute.xlu2 %272 }
  0xa5   :  { %v285_v34 = vperm.slane %v282_v31, 1  ;;  %v286_v37 = vperm.slane %v282_v31, 2  ;;  %v287_v38 = vperm.slane %v282_v31, 3  ;;  %v284_v39 = vperm.slane %v282_v31, 0 }
  0xa6   :  { %v170_v45 = vrot.slane %v163_v41, 5  ;;  %v171_v48 = vsel %vm85_vm4, %v160_v40, %v168_v43  ;;  %v210_v3 = vrot.slane %v203_v55, 7 }
  0xa8   :  { %v172_v50 = vsel %vm87_vm3, %v169_v42, %v170_v45 }
  0xa9   :  { %v173_v49 = vsel %vm89_vm5, %v171_v48, %v172_v50  ;;  %v324_v50 = vld [vmem:[#allocation3 + $0x127] ss:$8 sm:$0xf] }
  0xaa   :  { %176 = vst.msk [vmem:[#allocation2 + $0x2] ss:$8 sm:$0xf] %vm896_vm0, %v173_v49  ;;  %v185_v56 = vpop.permute.xlu1 %184  ;;  %v183_v57 = vpop.permute.xlu0 %182  ;;  %v329_v49 = vperm.slane %v324_v50, 3 }
  0xab   :  { %v190_v58 = vsel %vm186_vm8, %v185_v56, %v179_v35  ;;  %v187_v59 = vsel %vm186_vm8, %v183_v57, %v185_v56  ;;  %v188_v60 = vsel %vm186_vm8, %v181_v16, %v183_v57  ;;  %v222_v16 = vmul.f32 %v221_v13, %v890_v0 }
  0xac   :  { %v202_v61 = vmul.f32 %v194_v47, %v190_v58  ;;  %v204_v62 = vmul.f32 %v196_v51, %v188_v60  ;;  %v205_v63 = vmul.f32 %v197_v52, %v187_v59  ;;  %v260_v0 = vrot.slane %v253_v10, 5 }
  0xad   :  { %224 = vst.msk [vmem:[#allocation2 + $0x4] ss:$8 sm:$0xf] %vm896_vm0, %v222_v16  ;;  %v327_v56 = vperm.slane %v324_v50, 1  ;;  %v328_v57 = vperm.slane %v324_v50, 2  ;;  %v326_v59 = vperm.slane %v324_v50, 0 }
  0xae   :  { %v211_v4 = vrot.slane %v204_v62, 6  ;;  %v212_v5 = vrot.slane %v205_v63, 5  ;;  %v213_v8 = vsel %vm85_vm4, %v202_v61, %v210_v3  ;;  %v402_v16 = vld [vmem:[#allocation3 + $0x100] sm:$0x1] }
  0xb0   :  { %v214_v9 = vsel %vm87_vm3, %v211_v4, %v212_v5 }
  0xb1   :  { %v215_v15 = vsel %vm89_vm5, %v213_v8, %v214_v9 }
  0xb2   :  { %218 = vst.msk [vmem:[#allocation2 + $0x3] ss:$8 sm:$0xf] %vm896_vm0, %v215_v15  ;;  %v231_v17 = vpop.permute.xlu1 %230  ;;  %v229_v20 = vpop.permute.xlu0 %228  ;;  %v394_v15 = vld [vmem:[#allocation3] sm:$0xff] }
  0xb3   :  { %v235_v21 = vsel %vm234_vm9, %v231_v17, %v233_v54  ;;  %v236_v22 = vsel %vm234_vm9, %v229_v20, %v231_v17  ;;  %v237_v19 = vsel %vm234_vm9, %v227_v30, %v229_v20  ;;  %v313_v54 = vpop.permute.xlu2 %312 }
  0xb4   :  { %v252_v23 = vmul.f32 %v244_v6, %v235_v21  ;;  %v251_v24 = vmul.f32 %v243_v12, %v236_v22  ;;  %v250_v11 = vmul.f32 %v242_v18, %v237_v19  ;;  %v408_v21 = vld [vmem:[#allocation2 + $0x28] sm:$0xff]  ;;  %v395_v22 = vld [vmem:[#allocation3 + $0x20] sm:$0xff] }
  0xb5   :  { %v396_v19 = vld [vmem:[#allocation3 + $0x40] sm:$0xff] }
  0xb6   :  { %v259_v25 = vrot.slane %v252_v23, 6  ;;  %v258_v26 = vrot.slane %v251_v24, 7  ;;  %v397_v23 = vld [vmem:[#allocation3 + $0x60] sm:$0xff] }
  0xb7   :  { %v399_v24 = vld [vmem:[#allocation3 + $0xa0] sm:$0xff] }
  0xb8   :  { %v262_v27 = vsel %vm87_vm3, %v259_v25, %v260_v0  ;;  %v261_v28 = vsel %vm85_vm4, %v250_v11, %v258_v26  ;;  %v398_v0 = vld [vmem:[#allocation3 + $0x80] sm:$0xff] }
  0xb9   :  { %v263_v29 = vsel %vm89_vm5, %v261_v28, %v262_v27  ;;  %v400_v25 = vld [vmem:[#allocation3 + $0xc0] sm:$0xff] }
  0xba   :  { %266 = vst.msk [vmem:[#allocation2 + $0x5] ss:$8 sm:$0xf] %vm896_vm0, %v263_v29  ;;  %v271_v30 = vpop.permute.xlu1 %270  ;;  %v269_v33 = vpop.permute.xlu0 %268  ;;  %v401_v11 = vld [vmem:[#allocation3 + $0xe0] sm:$0xff] }
  0xbb   :  { %v278_v35 = vsel %vm276_vm10, %v271_v30, %v273_v32  ;;  %v279_v42 = vsel %vm276_vm10, %v269_v33, %v271_v30 }
  0xbc   :  { %v293_v36 = vmul.f32 %v285_v34, %v278_v35  ;;  %v292_v48 = vmul.f32 %v284_v39, %v279_v42 }
  0xbe   :  { %v300_v45 = vrot.slane %v293_v36, 7 }
  0xc0   :  { %v303_v53 = vsel %vm85_vm4, %v292_v48, %v300_v45 }
  0xc2   :  { %v311_v40 = vpop.permute.xlu1 %310  ;;  %v275_v41 = vpop.permute.xlu0 %274 }
  0xc3   :  { %v277_v43 = vsel %vm276_vm10, %v273_v32, %v275_v41  ;;  %v280_v44 = vsel %vm276_vm10, %v275_v41, %v269_v33  ;;  %v321_v62 = vsel %vm318_vm11, %v311_v40, %v313_v54 }
  0xc4   :  { %v294_v46 = vmul.f32 %v286_v37, %v277_v43  ;;  %v295_v47 = vmul.f32 %v287_v38, %v280_v44  ;;  %v334_v5 = vmul.f32 %v326_v59, %v321_v62 }
  0xc6   :  { %v301_v51 = vrot.slane %v294_v46, 6  ;;  %v302_v52 = vrot.slane %v295_v47, 5 }
  0xc8   :  { %v304_v55 = vsel %vm87_vm3, %v301_v51, %v302_v52 }
  0xc9   :  { %v305_v58 = vsel %vm89_vm5, %v303_v53, %v304_v55 }
  0xca   :  { %308 = vst.msk [vmem:[#allocation2 + $0x6] ss:$8 sm:$0xf] %vm896_vm0, %v305_v58  ;;  %v317_v60 = vpop.permute.xlu1 %316  ;;  %v315_v61 = vpop.permute.xlu0 %314 }
  0xcb   :  { %v322_v63 = vsel %vm318_vm11, %v317_v60, %v311_v40  ;;  %v319_v1 = vsel %vm318_vm11, %v315_v61, %v317_v60  ;;  %v320_v14 = vsel %vm318_vm11, %v313_v54, %v315_v61 }
  0xcc   :  { %v337_v2 = vmul.f32 %v329_v49, %v322_v63  ;;  %v335_v3 = vmul.f32 %v327_v56, %v320_v14  ;;  %v336_v4 = vmul.f32 %v328_v57, %v319_v1 }
  0xce   :  { %v344_v6 = vrot.slane %v337_v2, 5  ;;  %v342_v8 = vrot.slane %v335_v3, 7  ;;  %v343_v9 = vrot.slane %v336_v4, 6 }
  0xd0   :  { %v345_v10 = vsel %vm85_vm4, %v334_v5, %v342_v8  ;;  %v346_v12 = vsel %vm87_vm3, %v343_v9, %v344_v6 }
  0xd1   :  { %v347_v13 = vsel %vm89_vm5, %v345_v10, %v346_v12 }
  0xd2   :  { %350 = vst.msk [vmem:[#allocation2 + $0x7] ss:$8 sm:$0xf] %vm896_vm0, %v347_v13 }
  0xd9   :  { %v403_v17 = vld [vmem:[#allocation2] sm:$0xff]  ;;  %v405_v18 = vld [vmem:[#allocation2 + $0x10] sm:$0xff]  ;;  %v406_v20 = vld [vmem:[#allocation2 + $0x18] sm:$0xff] }
  0xda   :  { %454 = vmatpush.msra.mxu0 %v403_v17  ;;  %816 = vmatpush.msra.mxu1 %v403_v17  ;;  %v404_v7 = vld [vmem:[#allocation2 + $0x8] sm:$0xff] }
  0xdb   :  { %542 = vmatpush.msra.mxu2 %v405_v18  ;;  %586 = vmatpush.msra.mxu3 %v406_v20 }
  0xdc   :  { %777 = vmatmul.msk.f32.vlgmr.msra.gmra.mxu0 %vm411_vm12, %v394_v15  ;;  %785 = vmatmul.msk.f32.vlgmr.msra.gmra.mxu1 %vm411_vm12, %v402_v16 }
  0xdd   :  { %497 = vmatpush.msrb.mxu1 %v408_v21  ;;  %795 = vmatmul.msk.f32.vlgmr.msra.gmra.mxu2 %vm411_vm12, %v394_v15 }
  0xde   :  { %804 = vmatmul.msk.f32.vlgmr.msra.gmra.mxu3 %vm411_vm12, %v394_v15 }
  0xdf   :  { %498 = vmatpush.msrb.mxu1 %v404_v7  ;;  %v743_v7 = vld [vmem:[#allocation3 + $0x108] sm:$0x1] }
  0xe4   :  { %778 = vmatmul.msk.f32.gmra.mxu0 %vm411_vm12, %v395_v22  ;;  %786 = vmatmul.msk.f32.vlgmr.msrb.gmra.mxu1 %vm411_vm12, %v394_v15 }
  0xe5   :  { %796 = vmatmul.msk.f32.gmra.mxu2 %vm411_vm12, %v395_v22 }
  0xe6   :  { %805 = vmatmul.msk.f32.gmra.mxu3 %vm411_vm12, %v395_v22 }
  0xec   :  { %779 = vmatmul.msk.f32.gmra.mxu0 %vm411_vm12, %v396_v19  ;;  %787 = vmatmul.msk.f32.gmra.mxu1 %vm411_vm12, %v395_v22 }
  0xed   :  { %797 = vmatmul.msk.f32.gmra.mxu2 %vm411_vm12, %v396_v19 }
  0xee   :  { %806 = vmatmul.msk.f32.gmra.mxu3 %vm411_vm12, %v396_v19 }
  0xf4   :  { %780 = vmatmul.msk.f32.gmra.mxu0 %vm411_vm12, %v397_v23  ;;  %788 = vmatmul.msk.f32.gmra.mxu1 %vm411_vm12, %v396_v19  ;;  %v651_v19 = vld [vmem:[#allocation3 + $0x160] sm:$0xff] }
  0xf5   :  { %798 = vmatmul.msk.f32.gmra.mxu2 %vm411_vm12, %v397_v23 }
  0xf6   :  { %807 = vmatmul.msk.f32.gmra.mxu3 %vm411_vm12, %v397_v23 }
  0xfc   :  { %781 = vmatmul.msk.f32.gmra.mxu0 %vm411_vm12, %v398_v0  ;;  %789 = vmatmul.msk.f32.gmra.mxu1 %vm411_vm12, %v397_v23 }
  0xfd   :  { %799 = vmatmul.msk.f32.gmra.mxu2 %vm411_vm12, %v398_v0 }
  0xfe   :  { %808 = vmatmul.msk.f32.gmra.mxu3 %vm411_vm12, %v398_v0 }
 0x104   :  { %782 = vmatmul.msk.f32.gmra.mxu0 %vm411_vm12, %v399_v24  ;;  %790 = vmatmul.msk.f32.gmra.mxu1 %vm411_vm12, %v398_v0  ;;  %v742_v0 = vld [vmem:[#allocation3 + $0xe8] sm:$0xff] }
 0x105   :  { %800 = vmatmul.msk.f32.gmra.mxu2 %vm411_vm12, %v399_v24 }
 0x106   :  { %809 = vmatmul.msk.f32.gmra.mxu3 %vm411_vm12, %v399_v24 }
 0x10c   :  { %783 = vmatmul.msk.f32.gmra.mxu0 %vm411_vm12, %v400_v25  ;;  %791 = vmatmul.msk.f32.gmra.mxu1 %vm411_vm12, %v399_v24 }
 0x10d   :  { %801 = vmatmul.msk.f32.gmra.mxu2 %vm411_vm12, %v400_v25 }
 0x10e   :  { %810 = vmatmul.msk.f32.gmra.mxu3 %vm411_vm12, %v400_v25 }
 0x114   :  { %784 = vmatmul.msk.f32.gmra.mxu0 %vm411_vm12, %v401_v11  ;;  %792 = vmatmul.msk.f32.gmra.mxu1 %vm411_vm12, %v400_v25 }
 0x115   :  { %802 = vmatmul.msk.f32.gmra.mxu2 %vm411_vm12, %v401_v11 }
 0x116   :  { %811 = vmatmul.msk.f32.gmra.mxu3 %vm411_vm12, %v401_v11 }
 0x11c   :  { %793 = vmatmul.msk.f32.gmra.mxu1 %vm411_vm12, %v401_v11  ;;  %v741_v11 = vld [vmem:[#allocation3 + $0xc8] sm:$0xff] }
 0x11d   :  { %803 = vmatmul.msk.f32.gmra.mxu2 %vm411_vm12, %v402_v16 }
 0x11e   :  { %812 = vmatmul.msk.f32.gmra.mxu3 %vm411_vm12, %v402_v16 }
 0x124   :  { %794 = vmatmul.msk.f32.gmra.mxu1 %vm411_vm12, %v402_v16 }
 0x159   :  { %v1027_v26 = vpop.f32.mrf.mxu0  ;;  %v480_v27 = vpop.f32.mrf.mxu1 }
 0x15a   :  { %v647_v28 = vmax.f32 %v480_v27, 0.0  ;;  %v615_v20 = vmax.f32 %v1027_v26, 0.0  ;;  %v740_v27 = vld [vmem:[#allocation3 + $0xa8] sm:$0xff] }
 0x15c   :  { %662 = vmatpush.xpose.msrb.mxu0 %v647_v28 }
 0x160   :  { %v1029_v29 = vpop.f32.mrf.mxu2 }
 0x161   :  { %v1031_v31 = vpop.f32.mrf.mxu3  ;;  %v459_v32 = vpop.f32.mrf.mxu0 }
 0x162   :  { %v1033_v30 = vpop.f32.mrf.mxu1  ;;  %v619_v15 = vmax.f32 %v459_v32, 0.0 }
 0x168   :  { %v1035_v33 = vpop.f32.mrf.mxu2 }
 0x169   :  { %v1037_v34 = vpop.f32.mrf.mxu3  ;;  %v462_v35 = vpop.f32.mrf.mxu0 }
 0x16a   :  { %v1039_v36 = vpop.f32.mrf.mxu1  ;;  %v623_v9 = vmax.f32 %v462_v35, 0.0  ;;  %v739_v35 = vld [vmem:[#allocation3 + $0x88] sm:$0xff] }
 0x170   :  { %v1041_v37 = vpop.f32.mrf.mxu2 }
 0x171   :  { %v1043_v38 = vpop.f32.mrf.mxu3  ;;  %v465_v39 = vpop.f32.mrf.mxu0 }
 0x172   :  { %v1045_v40 = vpop.f32.mrf.mxu1  ;;  %v627_v3 = vmax.f32 %v465_v39, 0.0  ;;  %v625_v39 = vmax.f32 %v1041_v37, 0.0  ;;  %v618_v37 = vmax.f32 %v1031_v31, 0.0 }
 0x178   :  { %v1047_v41 = vpop.f32.mrf.mxu2 }
 0x179   :  { %v1049_v42 = vpop.f32.mrf.mxu3  ;;  %v468_v43 = vpop.f32.mrf.mxu0  ;;  %v629_v26 = vmax.f32 %v1047_v41, 0.0  ;;  %v621_v41 = vmax.f32 %v1035_v33, 0.0  ;;  %v652_v33 = vld [vmem:[#allocation3 + $0x168] sm:$0xff] }
 0x17a   :  { %v1051_v44 = vpop.f32.mrf.mxu1  ;;  %v631_v63 = vmax.f32 %v468_v43, 0.0  ;;  %v630_v28 = vmax.f32 %v1049_v42, 0.0  ;;  %v626_v43 = vmax.f32 %v1043_v38, 0.0  ;;  %v622_v42 = vmax.f32 %v1037_v34, 0.0  ;;  %v738_v34 = vld [vmem:[#allocation3 + $0x68] sm:$0xff] }
 0x17b   :  { %v628_v32 = vmax.f32 %v1051_v44, 0.0  ;;  %v620_v44 = vmax.f32 %v1039_v36, 0.0  ;;  %v616_v38 = vmax.f32 %v1033_v30, 0.0  ;;  %v737_v36 = vld [vmem:[#allocation3 + $0x48] sm:$0xff] }
 0x180   :  { %v1053_v45 = vpop.f32.mrf.mxu2 }
 0x181   :  { %v1055_v46 = vpop.f32.mrf.mxu3  ;;  %v471_v47 = vpop.f32.mrf.mxu0  ;;  %v633_v23 = vmax.f32 %v1053_v45, 0.0  ;;  %v624_v45 = vmax.f32 %v1045_v40, 0.0  ;;  %v653_v40 = vld [vmem:[#allocation3 + $0x170] sm:$0xff] }
 0x182   :  { %v1057_v48 = vpop.f32.mrf.mxu1  ;;  %v635_v61 = vmax.f32 %v471_v47, 0.0  ;;  %v634_v24 = vmax.f32 %v1055_v46, 0.0  ;;  %v617_v46 = vmax.f32 %v1029_v29, 0.0  ;;  %v654_v47 = vld [vmem:[#allocation3 + $0x178] sm:$0xff]  ;;  %v735_v29 = vld [vmem:[#allocation3 + $0x8] sm:$0xff] }
 0x183   :  { %v632_v25 = vmax.f32 %v1057_v48, 0.0  ;;  %v736_v48 = vld [vmem:[#allocation3 + $0x28] sm:$0xff] }
 0x188   :  { %v559_v50 = vpop.f32.mrf.mxu2 }
 0x189   :  { %v603_v51 = vpop.f32.mrf.mxu3  ;;  %v474_v52 = vpop.f32.mrf.mxu0  ;;  %v637_v18 = vmax.f32 %v559_v50, 0.0 }
 0x18a   :  { %v515_v49 = vpop.f32.mrf.mxu1  ;;  %v639_v58 = vmax.f32 %v474_v52, 0.0  ;;  %v638_v21 = vmax.f32 %v603_v51, 0.0 }
 0x18b   :  { %v636_v22 = vmax.f32 %v515_v49, 0.0 }
 0x190   :  { %v562_v53 = vpop.f32.mrf.mxu2 }
 0x191   :  { %v606_v54 = vpop.f32.mrf.mxu3  ;;  %v477_v55 = vpop.f32.mrf.mxu0  ;;  %v641_v13 = vmax.f32 %v562_v53, 0.0 }
 0x192   :  { %v643_v56 = vmax.f32 %v477_v55, 0.0  ;;  %v518_v57 = vpop.f32.mrf.mxu1  ;;  %v642_v16 = vmax.f32 %v606_v54, 0.0 }
 0x193   :  { %v640_v17 = vmax.f32 %v518_v57, 0.0 }
 0x194   :  { %663 = vmatpush.xpose.msrb.mxu0 %v643_v56 }
 0x198   :  { %v565_v59 = vpop.f32.mrf.mxu2  ;;  %664 = vmatpush.xpose.msrb.mxu0 %v639_v58 }
 0x199   :  { %v609_v60 = vpop.f32.mrf.mxu3  ;;  %v645_v8 = vmax.f32 %v565_v59, 0.0 }
 0x19a   :  { %v521_v62 = vpop.f32.mrf.mxu1  ;;  %v646_v10 = vmax.f32 %v609_v60, 0.0 }
 0x19b   :  { %v644_v12 = vmax.f32 %v521_v62, 0.0 }
 0x19c   :  { %665 = vmatpush.xpose.msrb.mxu0 %v635_v61 }
 0x1a0   :  { %v568_v1 = vpop.f32.mrf.mxu2  ;;  %666 = vmatpush.xpose.msrb.mxu0 %v631_v63 }
 0x1a1   :  { %v649_v14 = vmax.f32 %v568_v1, 0.0  ;;  %v612_v2 = vpop.f32.mrf.mxu3 }
 0x1a2   :  { %v650_v4 = vmax.f32 %v612_v2, 0.0  ;;  %v524_v5 = vpop.f32.mrf.mxu1 }
 0x1a3   :  { %v648_v6 = vmax.f32 %v524_v5, 0.0  ;;  %702 = vmatpush.xpose.msrb.mxu2 %v649_v14 }
 0x1a4   :  { %722 = vmatpush.xpose.msrb.mxu3 %v650_v4  ;;  %667 = vmatpush.xpose.msrb.mxu0 %v627_v3 }
 0x1a5   :  { %682 = vmatpush.xpose.msra.mxu1 %v648_v6 }
 0x1a7   :  { %703 = vmatpush.xpose.msrb.mxu2 %v645_v8 }
 0x1a8   :  { %723 = vmatpush.xpose.msrb.mxu3 %v646_v10  ;;  %668 = vmatpush.xpose.msrb.mxu0 %v623_v9 }
 0x1a9   :  { %683 = vmatpush.xpose.msra.mxu1 %v644_v12 }
 0x1ab   :  { %704 = vmatpush.xpose.msrb.mxu2 %v641_v13 }
 0x1ac   :  { %724 = vmatpush.xpose.msrb.mxu3 %v642_v16  ;;  %669 = vmatpush.xpose.msrb.mxu0 %v619_v15 }
 0x1ad   :  { %684 = vmatpush.xpose.msra.mxu1 %v640_v17 }
 0x1af   :  { %705 = vmatpush.xpose.msrb.mxu2 %v637_v18 }
 0x1b0   :  { %725 = vmatpush.xpose.msrb.mxu3 %v638_v21  ;;  %670 = vmatpush.xpose.msrb.mxu0 %v615_v20 }
 0x1b1   :  { %685 = vmatpush.xpose.msra.mxu1 %v636_v22 }
 0x1b3   :  { %706 = vmatpush.xpose.msrb.mxu2 %v633_v23  ;;  %671 = vmatmul.f32.vlgmr.msrb.gmra.mxu0 %v651_v19 }
 0x1b4   :  { %813 = vmatpush.msk.msra.mxu0 %vm85_vm4, %v743_v7  ;;  %726 = vmatpush.xpose.msrb.mxu3 %v634_v24 }
 0x1b5   :  { %686 = vmatpush.xpose.msra.mxu1 %v632_v25 }
 0x1b6   :  { %759 = vmatpush.msra.mxu0 %v742_v0 }
 0x1b7   :  { %707 = vmatpush.xpose.msrb.mxu2 %v629_v26 }
 0x1b8   :  { %760 = vmatpush.msra.mxu0 %v741_v11  ;;  %727 = vmatpush.xpose.msrb.mxu3 %v630_v28 }
 0x1b9   :  { %687 = vmatpush.xpose.msra.mxu1 %v628_v32 }
 0x1ba   :  { %761 = vmatpush.msra.mxu0 %v740_v27 }
 0x1bb   :  { %708 = vmatpush.xpose.msrb.mxu2 %v625_v39 }
 0x1bc   :  { %762 = vmatpush.msra.mxu0 %v739_v35  ;;  %728 = vmatpush.xpose.msrb.mxu3 %v626_v43 }
 0x1bd   :  { %688 = vmatpush.xpose.msra.mxu1 %v624_v45 }
 0x1be   :  { %763 = vmatpush.msra.mxu0 %v738_v34 }
 0x1bf   :  { %709 = vmatpush.xpose.msrb.mxu2 %v621_v41 }
 0x1c0   :  { %729 = vmatpush.xpose.msrb.mxu3 %v622_v42  ;;  %764 = vmatpush.msra.mxu0 %v737_v36 }
 0x1c1   :  { %689 = vmatpush.xpose.msra.mxu1 %v620_v44 }
 0x1c2   :  { %765 = vmatpush.msra.mxu0 %v736_v48 }
 0x1c3   :  { %710 = vmatpush.xpose.msrb.mxu2 %v617_v46 }
 0x1c4   :  { %730 = vmatpush.xpose.msrb.mxu3 %v618_v37  ;;  %766 = vmatpush.msra.mxu0 %v735_v29 }
 0x1c5   :  { %690 = vmatpush.xpose.msra.mxu1 %v616_v38 }
 0x1c6   :  { %711 = vmatmul.f32.vlgmr.msrb.gmra.mxu2 %v653_v40 }
 0x1c7   :  { %731 = vmatmul.f32.vlgmr.msrb.gmra.mxu3 %v654_v47 }
 0x1c8   :  { %691 = vmatmul.f32.vlgmr.msra.gmra.mxu1 %v652_v33 }
 0x230   :  { %v672_v31 = vpop.f32.mrf.mxu0 }
 0x245   :  { %v692_v50 = vpop.f32.mrf.mxu1 }
 0x246   :  { %v693_v30 = vadd.f32 %v692_v50, %v672_v31 }
 0x249   :  { %v712_v51 = vpop.f32.mrf.mxu2 }
 0x24a   :  { %v713_v52 = vadd.f32 %v712_v51, %v693_v30  ;;  %v732_v49 = vpop.f32.mrf.mxu3 }
 0x24c   :  { %v733_v53 = vadd.f32 %v732_v49, %v713_v52 }
 0x24e   :  { %814 = vmatmul.msk.f32.vlgmr.msra.gmra.mxu0 %vm744_vm13, %v733_v53 }
 0x2cb   :  { %v768_v54 = vpop.f32.mrf.mxu0 }
 0x2cc   :  { %771 = vst [vmem:[%s1081_s2] sm:$0xff] %v768_v54 }
 0x2cd   :  { %776 = vsyncpa [#allocation4], 1 }

</bundles_post_ra>
